<compile_context>
chip_gen: v5e
topology: v5e:2x2
jax: 0.10.0
libtpu: 0.0.40
codegen_flags: <defaults>
</compile_context>

<pallas_src>
import functools

import jax
import jax.numpy as jnp
from jax.experimental import pallas as pl
from jax.experimental.pallas import tpu as pltpu

_LANE = 128


def _round_up(x, m):
    return (x + m - 1) // m * m


@functools.lru_cache(maxsize=None)
def _num_tensorcores():
    """TensorCores addressable via a leading 'parallel' grid axis (2 on v7x, 1 on v5e/v6e)."""
    try:
        dev = jax.devices()[0]
    except Exception:
        return 1
    for attr in ("num_cores", "core_count"):
        try:
            v = getattr(dev, attr, None)
        except Exception:
            v = None
        if isinstance(v, int) and v > 0:
            return max(1, min(int(v), 2))
    try:
        kind = str(getattr(dev, "device_kind", "")).lower()
    except Exception:
        kind = ""
    single_tc = ("v2", "v3", "v5e", "v5 lite", "v5lite", "v6e", "v6 lite", "trillium")
    if any(s in kind for s in single_tc):
        return 1
    return 2


@functools.lru_cache(maxsize=None)
def _vmem_capacity_bytes():
    try:
        info = pltpu.get_tpu_info()
        v = getattr(info, "vmem_capacity_bytes", None)
        if isinstance(v, int) and v > 0:
            return v
    except Exception:
        pass
    return 64 * 1024 * 1024  # conservative fallback (v7x has the smallest VMEM)


def _plan_tiling(n_rows, num_classes, itemsize):
    """Pick (chunk_n, chunks_per_tile, tile_n, num_tiles, vmem_limit) from a VMEM model."""
    sub_mult = {4: 8, 2: 16, 1: 32}.get(itemsize, 8)   # dtype-specific sublane multiple
    c_pad = _round_up(num_classes, _LANE)              # lane padding of the class dim

    vmem_cap = _vmem_capacity_bytes()
    vmem_budget = int(vmem_cap * 0.70)

    # Compute granularity of the in-kernel sub-chunk loop (sublane-dim slice of the tile).
    chunk_n = min(512, _round_up(min(max(n_rows, 1), 512), sub_mult))
    # Keep per-chunk temporaries bounded when the class dim is large.
    chunk_n = min(chunk_n, max(sub_mult, (1 << 20) // (c_pad * 4) // sub_mult * sub_mult))
    chunk_n = max(chunk_n, sub_mult)

    cm_bytes = 2 * _round_up(num_classes, 8) * c_pad * 4   # resident (1, C, C) f32 block
    inter_bytes = 12 * chunk_n * c_pad * 4                  # body temporaries (generous)

    # TODO(synk): tile the confusion matrix over a class-dim grid axis for very large C;
    # for now the resident accumulator must fit the VMEM budget (v7x: 64 MiB physical).
    assert cm_bytes + inter_bytes < vmem_budget, (
        f"num_classes={num_classes}: resident (C, C) confusion-matrix accumulator "
        f"({cm_bytes / 2**20:.1f} MiB) does not fit the VMEM budget "
        f"({vmem_budget / 2**20:.1f} MiB)")

    # Per batch row: double-buffered logits block (C lane-padded) + double-buffered labels.
    row_cost = 2 * c_pad * itemsize + 2 * 4
    rows_cap = max(chunk_n, (vmem_budget - cm_bytes - inter_bytes) // row_cost)
    rows_needed = _round_up(max(n_rows, 1), chunk_n)

    tile_n = max(chunk_n, min(rows_needed, rows_cap // chunk_n * chunk_n))
    if tile_n < rows_needed:
        # More than one batch tile: the labels block's sublane dim (chunks_per_tile)
        # must then be a multiple of 8.
        if tile_n < 8 * chunk_n:
            chunk_n = max(sub_mult, (tile_n // 8) // sub_mult * sub_mult)
        quantum = 8 * chunk_n
        tile_n = max(quantum, tile_n // quantum * quantum)
    chunks_per_tile = tile_n // chunk_n
    num_tiles = max(1, -(-n_rows // tile_n))

    labels_bytes = 2 * _round_up(chunks_per_tile, 8) * _round_up(chunk_n, _LANE) * 4
    logits_bytes = 2 * tile_n * c_pad * itemsize
    vmem_needed = logits_bytes + labels_bytes + cm_bytes + inter_bytes
    vmem_limit = int(min(vmem_cap - (4 << 20), max(vmem_needed + (4 << 20), 32 << 20)))

    return chunk_n, chunks_per_tile, tile_n, num_tiles, vmem_limit


def _make_cm_kernel(n_rows, num_classes, tile_n, chunk_n, chunks_per_tile, tiles_per_core):
    def kernel(logits_ref, labels_ref, cm_ref):
        # logits_ref: (tile_n, C) input dtype      labels_ref: (chunks_per_tile, chunk_n) i32
        # cm_ref:     (1, C, C) f32, this core's partial confusion matrix (resident
        #             accumulator across the "arbitrary" grid axis).
        @pl.when(pl.program_id(1) == 0)
        def _init():
            cm_ref[...] = jnp.zeros_like(cm_ref)

        # Unclamped tile id; the BlockSpec index_map clamps the DMA for phantom / ragged
        # tiles, and the validity mask below zeroes their contribution.
        tile = pl.program_id(0) * tiles_per_core + pl.program_id(1)
        base = tile * tile_n

        def chunk_body(i, acc):
            r0 = pl.multiple_of(i * chunk_n, chunk_n)
            x = logits_ref[pl.ds(r0, chunk_n), :]                 # (chunk_n, C)
            lab = labels_ref[pl.ds(i, 1), :]                      # (1, chunk_n) int32

            # argmax over classes, first-occurrence tie-break (torch.argmax semantics);
            # softmax is dropped because it is monotone and cannot change the argmax.
            col = jax.lax.broadcasted_iota(jnp.int32, (chunk_n, num_classes), 1)
            m = jnp.max(x, axis=-1, keepdims=True)
            cand = jnp.where(x == m, col, jnp.int32(num_classes))
            pred_idx = jnp.min(cand, axis=-1, keepdims=True)      # (chunk_n, 1)
            pred_oh = (col == pred_idx).astype(jnp.bfloat16)      # (chunk_n, C)

            # Label one-hot built directly transposed -> plain (no-transpose) MXU matmul.
            cls = jax.lax.broadcasted_iota(jnp.int32, (num_classes, chunk_n), 0)
            pos = jax.lax.broadcasted_iota(jnp.int32, (num_classes, chunk_n), 1)
            valid = (base + r0 + pos) < n_rows                    # masks padded/phantom rows
            lab_oh_t = ((cls == lab) & valid).astype(jnp.bfloat16)  # (C, chunk_n)

            # CM[t, p] += sum_n lab_oh_t[t, n] * pred_oh[n, p]  (bf16 MXU, f32 accumulate)
            return acc + jnp.dot(lab_oh_t, pred_oh, preferred_element_type=jnp.float32)

        cm_ref[0] += jax.lax.fori_loop(
            0, chunks_per_tile, chunk_body,
            jnp.zeros((num_classes, num_classes), jnp.float32),
            unroll=min(chunks_per_tile, 4))

    return kernel


def _metrics_from_cm(cm):
    """Macro multiclass accuracy + Cohen's kappa from a (C, C) confusion matrix."""
    tp = jnp.diagonal(cm)
    support = jnp.sum(cm, axis=1)                  # tp + fn per class
    pred_cnt = jnp.sum(cm, axis=0)                 # tp + fp per class
    n = jnp.sum(cm)

    # torchmetrics MulticlassAccuracy default average='macro':
    # per-class recall, averaged over classes with tp + fp + fn > 0.
    per_class = jnp.where(support > 0, tp / jnp.maximum(support, 1.0), 0.0)
    mask = ((support + pred_cnt - tp) > 0).astype(jnp.float32)
    acc = jnp.sum(per_class * mask) / jnp.maximum(jnp.sum(mask), 1.0)

    # torchmetrics CohenKappa (weights=None), guarded against n == 0 and p_e == 1.
    n_safe = jnp.maximum(n, 1.0)
    p_o = jnp.trace(cm) / n_safe
    p_e = jnp.sum(support * pred_cnt) / (n_safe * n_safe)
    denom = 1.0 - p_e
    safe_denom = jnp.where(jnp.abs(denom) > 1e-12, denom, 1.0)
    kappa = jnp.where(jnp.abs(denom) > 1e-12, (p_o - p_e) / safe_denom, 0.0)
    return dict(acc=acc, kappa=kappa)


@jax.jit
def classification_metric(logits, labels):
    """Replicates BasicClassificationMetric.forward for a single batch.

    logits: (N, C) float; labels: (N,) int.
    Returns dict(acc=macro multiclass accuracy, kappa=Cohen's kappa).
    """
    N, C = logits.shape
    itemsize = jnp.dtype(logits.dtype).itemsize
    chunk_n, chunks_per_tile, tile_n, num_tiles, vmem_limit = _plan_tiling(N, C, itemsize)

    num_cores = _num_tensorcores()
    tiles_per_core = -(-num_tiles // num_cores)

    # Lane-dense label layout: (num_tiles * chunks_per_tile, chunk_n) int32.  Padded rows
    # beyond N are masked in-kernel, so zero-fill is safe (and labels are tiny in HBM).
    labels_flat = jnp.pad(labels.astype(jnp.int32), (0, num_tiles * tile_n - N))
    labels2d = labels_flat.reshape(num_tiles * chunks_per_tile, chunk_n)

    def in_map(c, j):
        # Clamp so phantom tiles (core split / ragged last tile) never DMA out of bounds.
        return (jnp.minimum(c * tiles_per_core + j, num_tiles - 1), 0)

    flops = 2 * num_cores * tiles_per_core * chunks_per_tile * chunk_n * C * C
    bytes_accessed = N * C * itemsize + N * 4 + num_cores * C * C * 4

    cm_slabs = pl.pallas_call(
        _make_cm_kernel(N, C, tile_n, chunk_n, chunks_per_tile, tiles_per_core),
        out_shape=jax.ShapeDtypeStruct((num_cores, C, C), jnp.float32),
        grid=(num_cores, tiles_per_core),
        in_specs=[
            pl.BlockSpec((tile_n, C), in_map),              # class dim = full extent
            pl.BlockSpec((chunks_per_tile, chunk_n), in_map),
        ],
        out_specs=pl.BlockSpec((1, C, C), lambda c, j: (c, 0, 0)),
        compiler_params=pltpu.CompilerParams(
            dimension_semantics=("parallel", "arbitrary"),
            vmem_limit_bytes=vmem_limit),
        cost_estimate=pl.CostEstimate(flops=flops, transcendentals=0,
                                      bytes_accessed=bytes_accessed),
    )(logits, labels2d)

    cm = jnp.sum(cm_slabs, axis=0)                          # (C, C) confusion matrix
    return _metrics_from_cm(cm)


if __name__ == "__main__":
    key = jax.random.PRNGKey(0)
    k_logits, k_labels = jax.random.split(key)

    # "head" embedding: (batch=8, num_classes=4) logits; labels: (8,) ints in [0, 4)
    logits = jax.random.normal(k_logits, (8, 4), dtype=jnp.float32)
    labels = jax.random.randint(k_labels, (8,), 0, 4, dtype=jnp.int32)

    out = jax.block_until_ready(classification_metric(logits, labels))

    # Pure-JAX reference: argmax + scatter confusion matrix through the same glue.
    preds = jnp.argmax(logits, axis=1)
    ref_cm = jnp.zeros((4, 4), jnp.float32).at[labels, preds].add(1.0)
    ref = _metrics_from_cm(ref_cm)

    assert jnp.isfinite(out["acc"]) and jnp.isfinite(out["kappa"])
    assert jnp.allclose(out["acc"], ref["acc"], atol=1e-5), (out, ref)
    assert jnp.allclose(out["kappa"], ref["kappa"], atol=1e-5), (out, ref)
    print("KERNEL_OK")
</pallas_src>

<mosaic_0001>
module attributes {stable_mosaic.version = 11 : i64} {
  func.func @kernel(%arg0: i32, %arg1: i32, %arg2: memref<8x4xf32, #tpu.memory_space<vmem>>, %arg3: memref<1x8xi32, #tpu.memory_space<vmem>>, %arg4: memref<1x4x4xf32, #tpu.memory_space<vmem>>) attributes {dimension_semantics = [#tpu.dimension_semantics<parallel>, #tpu.dimension_semantics<arbitrary>], iteration_bounds = array<i64: 2, 1>, scalar_prefetch = 0 : i64, scratch_operands = 0 : i64, tpu.core_type = #tpu.core_type<tc>, window_params = [{transform_indices = @transform_0, window_bounds = array<i64: 8, 4>}, {transform_indices = @transform_1, window_bounds = array<i64: 1, 8>}, {transform_indices = @transform_2, window_bounds = array<i64: 1, 4, 4>}]} {
    %c0_i32 = arith.constant 0 : i32
    %0 = arith.cmpi eq, %arg1, %c0_i32 : i32
    %1 = arith.extui %0 : i1 to i32
    %c0_i32_0 = arith.constant 0 : i32
    %2 = arith.cmpi ne, %1, %c0_i32_0 : i32
    scf.if %2 {
      %cst_15 = arith.constant 0.000000e+00 : f32
      %48 = vector.broadcast %cst_15 : f32 to vector<1x4x4xf32>
      %c0_16 = arith.constant 0 : index
      %c0_17 = arith.constant 0 : index
      %c0_18 = arith.constant 0 : index
      %49 = vector.load %arg4[%c0_16, %c0_17, %c0_18] : memref<1x4x4xf32, #tpu.memory_space<vmem>>, vector<1x4x4xf32>
      tpu.vector_store %arg4[%c0_16, %c0_17, %c0_18], %48 {strides = array<i32>} : memref<1x4x4xf32, #tpu.memory_space<vmem>>, vector<1x4x4xf32>,
    } else {
    }
    %c1_i32 = arith.constant 1 : i32
    %3 = arith.muli %arg0, %c1_i32 : i32
    %4 = arith.addi %3, %arg1 : i32
    %c8_i32 = arith.constant 8 : i32
    %5 = arith.muli %4, %c8_i32 : i32
    %c0 = arith.constant 0 : index
    %c0_1 = arith.constant 0 : index
    %c0_2 = arith.constant 0 : index
    %6 = vector.load %arg4[%c0, %c0_1, %c0_2] : memref<1x4x4xf32, #tpu.memory_space<vmem>>, vector<1x4x4xf32>
    %7 = vector.shape_cast %6 : vector<1x4x4xf32> to vector<4x4xf32>
    %cst = arith.constant 0.000000e+00 : f32
    %8 = vector.broadcast %cst : f32 to vector<4x4xf32>
    %c0_i32_3 = arith.constant 0 : i32
    %c8_i32_4 = arith.constant 8 : i32
    %9 = arith.muli %c0_i32_3, %c8_i32_4 : i32
    %10 = tpu.assume_multiple %9, 8 : i32
    %11 = arith.index_cast %10 : i32 to index
    %c0_5 = arith.constant 0 : index
    %12 = vector.load %arg2[%11, %c0_5] : memref<8x4xf32, #tpu.memory_space<vmem>>, vector<8x4xf32>
    %13 = arith.index_cast %c0_i32_3 : i32 to index
    %c0_6 = arith.constant 0 : index
    %14 = vector.load %arg3[%13, %c0_6] : memref<1x8xi32, #tpu.memory_space<vmem>>, vector<1x8xi32>
    %15 = tpu.iota {dimensions = array<i32: 1>} : vector<8x4xi32>
    %cst_7 = arith.constant dense<0xFF800000> : vector<8xf32>
    %16 = vector.multi_reduction <maximumf>, %12, %cst_7 [1] : vector<8x4xf32> to vector<8xf32>
    %17 = vector.shape_cast %16 : vector<8xf32> to vector<8x1xf32>
    %18 = vector.broadcast %17 : vector<8x1xf32> to vector<8x4xf32>
    %19 = arith.cmpf oeq, %12, %18 : vector<8x4xf32>
    %c4_i32 = arith.constant 4 : i32
    %20 = vector.broadcast %c4_i32 : i32 to vector<8x4xi32>
    %21 = arith.select %19, %15, %20 : vector<8x4xi1>, vector<8x4xi32>
    %cst_8 = arith.constant dense<2147483647> : vector<8xi32>
    %22 = vector.multi_reduction <minsi>, %21, %cst_8 [1] : vector<8x4xi32> to vector<8xi32>
    %23 = vector.shape_cast %22 : vector<8xi32> to vector<8x1xi32>
    %24 = vector.broadcast %23 : vector<8x1xi32> to vector<8x4xi32>
    %25 = arith.cmpi eq, %15, %24 : vector<8x4xi32>
    %26 = arith.extui %25 : vector<8x4xi1> to vector<8x4xi32>
    %27 = arith.sitofp %26 : vector<8x4xi32> to vector<8x4xf32>
    %28 = arith.truncf %27 : vector<8x4xf32> to vector<8x4xbf16>
    %29 = tpu.iota {dimensions = array<i32: 0>} : vector<4x8xi32>
    %30 = tpu.iota {dimensions = array<i32: 1>} : vector<4x8xi32>
    %31 = arith.addi %5, %10 : i32
    %32 = vector.broadcast %31 : i32 to vector<4x8xi32>
    %33 = arith.addi %32, %30 : vector<4x8xi32>
    %c8_i32_9 = arith.constant 8 : i32
    %34 = vector.broadcast %c8_i32_9 : i32 to vector<4x8xi32>
    %35 = arith.cmpi slt, %33, %34 : vector<4x8xi32>
    %36 = vector.broadcast %14 : vector<1x8xi32> to vector<4x8xi32>
    %37 = arith.cmpi eq, %29, %36 : vector<4x8xi32>
    %38 = arith.andi %37, %35 : vector<4x8xi1>
    %39 = arith.extui %38 : vector<4x8xi1> to vector<4x8xi32>
    %40 = arith.sitofp %39 : vector<4x8xi32> to vector<4x8xf32>
    %41 = arith.truncf %40 : vector<4x8xf32> to vector<4x8xbf16>
    %cst_10 = arith.constant dense<0.000000e+00> : vector<4x4xf32>
    %42 = tpu.matmul %41, %28, %cst_10 {dimension_numbers = #tpu.dot_dimension_numbers<[1], [0], [0], [1], [0, 0, 1, 1], [], []>} : vector<4x8xbf16>, vector<8x4xbf16>, vector<4x4xf32> -> vector<4x4xf32>
    %43 = arith.addf %8, %42 : vector<4x4xf32>
    %c1_i32_11 = arith.constant 1 : i32
    %44 = arith.addf %7, %43 : vector<4x4xf32>
    %c0_12 = arith.constant 0 : index
    %c0_13 = arith.constant 0 : index
    %c0_14 = arith.constant 0 : index
    %45 = vector.load %arg4[%c0_12, %c0_13, %c0_14] : memref<1x4x4xf32, #tpu.memory_space<vmem>>, vector<1x4x4xf32>
    %46 = vector.shape_cast %45 : vector<1x4x4xf32> to vector<4x4xf32>
    %47 = vector.shape_cast %44 : vector<4x4xf32> to vector<1x4x4xf32>
    tpu.vector_store %arg4[%c0_12, %c0_13, %c0_14], %47 {strides = array<i32>} : memref<1x4x4xf32, #tpu.memory_space<vmem>>, vector<1x4x4xf32>,
    return
  }
  func.func @transform_0(%arg0: i32, %arg1: i32) -> (i32, i32) {
    %c1_i32 = arith.constant 1 : i32
    %0 = arith.muli %arg0, %c1_i32 : i32
    %1 = arith.addi %0, %arg1 : i32
    %c0_i32 = arith.constant 0 : i32
    %2 = arith.minsi %1, %c0_i32 : i32
    %c0_i32_0 = arith.constant 0 : i32
    %c0_i32_1 = arith.constant 0 : i32
    return %2, %c0_i32_0 : i32, i32
  }
  func.func @transform_1(%arg0: i32, %arg1: i32) -> (i32, i32) {
    %c1_i32 = arith.constant 1 : i32
    %0 = arith.muli %arg0, %c1_i32 : i32
    %1 = arith.addi %0, %arg1 : i32
    %c0_i32 = arith.constant 0 : i32
    %2 = arith.minsi %1, %c0_i32 : i32
    %c0_i32_0 = arith.constant 0 : i32
    %c0_i32_1 = arith.constant 0 : i32
    return %2, %c0_i32_0 : i32, i32
  }
  func.func @transform_2(%arg0: i32, %arg1: i32) -> (i32, i32, i32) {
    %c0_i32 = arith.constant 0 : i32
    %c0_i32_0 = arith.constant 0 : i32
    %c0_i32_1 = arith.constant 0 : i32
    return %arg0, %c0_i32, %c0_i32_0 : i32, i32, i32
  }
}

</mosaic_0001>

<bundles_post_ra>
// kernel: classification_metric.1
= control target key start
LH: loop header
LB: loop body
LE: loop exit
PB: predicated region body
PF: predicated region fallthrough
CT: control target
= control target key end

     0   :  { %s437_s9 = smov 0   ;;  %s439_s10 = smov 0   ;;  %s491_s0 = inlined_call_operand.vmem [shape: f32[8,4], index: 0, kind: input, shape index: {}]   ;;  %s492_s1 = inlined_call_operand.vmem [shape: s32[1,8], index: 1, kind: input, shape index: {}]   ;;  %s493_s2 = inlined_call_operand.vmem [shape: f32[2,4,4], index: 2, kind: output, shape index: {}]  }
   0x1   :  { %s441_s11 = smov 0  }
   0x2 LB: > { %s24_s12 = sadd.s32 1, %s415_s10  ;;  %p356_p0 = scmp.ge.s32.totalorder %s419_s11, 1  ;;  %s419_s11 = sphi %s441_s11, %s12_s11   ;;  %s415_s10 = sphi %s439_s10, %s495_s10   ;;  %s411_s9 = sphi %s437_s9, %s494_s9  }
   0x3   : > { %p26_p1 = scmp.ge.s32.totalorder %s24_s12, 2  ;;  %p155_p2 = scmp.lt.s32.totalorder %s419_s11, 3 }
   0x5   : > { %s497_s12 = smov (%p26_p1, %s24_s12), 0  ;;  %p156_p3 = pnand %p356_p0, %p155_p2 }
   0x6   : > { %p185_p4 = scmp.lt.s32.totalorder (!%p156_p3), %s411_s9, 0  ;;  %p203_p5 = scmp.lt.s32.totalorder (!%p156_p3), %s411_s9, 1 }
   0x7   : > { %159 = sbr.rel (%p156_p3) target bundleno = 522 (0x20a), region = 28  ;;  %s365_s26 = sshll.u32 (!%p156_p3), %s411_s9, 3 }
   0xc   : > { %s186_s13 = scalar_select %p185_p4, %s411_s9, 0  ;;  %vm221_vm0 = vcmask 31744   ;;  %v219_v2 = vlaneseq  ;;  %vm212_vm3 = vcmask 27648   ;;  %v421_v13 = vmov 0.0  }
   0xd   : > { %s204_s21 = scalar_select %p203_p5, %s411_s9, 1  ;;  %v249_v14 = vstv %s365_s26  ;;  %vm262_vm8 = vcmask 1043456   ;;  %vm258_vm9 = vcmask 64512  }
   0xe   : > { %s499_s13 = smov (!%p185_p4, %s186_s13), 0  ;;  %v220_v3 = vand.u32 127, %v219_v2  ;;  %v247_v16 = vshrl.u32 %v219_v2, 7 }
   0xf   : > { %s360_s14 = sshll.u32 %s499_s13, 3  ;;  %s199_s17 = scalar_lea.vmem %s492_s1, %s499_s13 }
  0x10   : > { %s190_s20 = scalar_lea.vmem %s491_s0, %s360_s14  ;;  %s364_s22 = sshll.u32 %s204_s21, 2  ;;  %v396_v15 = vld [vmem:[%s199_s17] ss:$0 sm:$0xff]  ;;  %v250_v17 = vadd.s32 %v249_v14, %v220_v3 }
  0x11   : > { %v217_v0 = vld [vmem:[%s190_s20] sm:$0xff]  ;;  %s206_s25 = scalar_lea.vmem %s493_s2, %s364_s22  ;;  %vm253_vm5 = vcmp.eq.s32.totalorder %v247_v16, %v396_v15 }
  0x12   : > { %v222_v1 = vsel %vm221_vm0, %v217_v0, -inf  ;;  %213 = vst.msk [vmem:[%s206_s25] sm:$0xf] %vm212_vm3, %v421_v13  ;;  %vm251_vm4 = vcmp.lt.s32.totalorder %v250_v17, 8 }
  0x13   : > { %223 = vmax.xlane.f32.xlu0 %v222_v1  ;;  %vm254_vm6 = vmand %vm253_vm5, %vm251_vm4 }
  0x14   : > { %v367_v24 = vsel %vm254_vm6, 1.0, %v421_v13 }
  0x15   : > { %v257_v27 = vpack.c.bf16 %v367_v24, %v367_v24 }
  0x19   : > { %v216_v28 = vld [vmem:[%s206_s25] sm:$0xf] }
  0x86   : > { %v224_v4 = vpop.xlane.xlu0 %223 }
  0x87   : > { %vm225_vm1 = vcmp.eq.f32.partialorder %v217_v0, %v224_v4 }
  0x88   : > { %v226_v5 = vsel %vm225_vm1, %v220_v3, 4 }
  0x89   : > { %v227_v6 = vsel %vm221_vm0, %v226_v5, 2147483647 }
  0x8a   : > { %v229_v7 = vshra.s32 %v227_v6, 16  ;;  %v228_v9 = vand.u32 65535, %v227_v6 }
  0x8c   : > { %v231_v8 = vcvt.s32.f32 %v229_v7  ;;  %v230_v11 = vcvt.s32.f32 %v228_v9 }
  0x8e   : > { %232 = vmin.xlane.f32.xlu0 %v231_v8 }
 0x101   : > { %v233_v10 = vpop.xlane.xlu0 %232 }
 0x102   : > { %vm234_vm2 = vcmp.eq.f32.partialorder %v231_v8, %v233_v10  ;;  %v239_v18 = vcvt.f32.s32 %v233_v10 }
 0x103   : > { %v235_v12 = vsel %vm234_vm2, %v230_v11, inf }
 0x104   : > { %236 = vmin.xlane.f32.xlu1 %v235_v12  ;;  %v240_v20 = vshll.u32 %v239_v18, 16 }
 0x177   : > { %v237_v19 = vpop.xlane.xlu1 %236 }
 0x178   : > { %v238_v21 = vcvt.f32.s32 %v237_v19 }
 0x17a   : > { %v241_v22 = vadd.s32 %v240_v20, %v238_v21 }
 0x17c   : > { %vm242_vm7 = vcmp.eq.s32.totalorder %v220_v3, %v241_v22 }
 0x17d   : > { %v366_v23 = vsel %vm242_vm7, 1.0, %v421_v13 }
 0x17e   : > { %v245_v25 = vpack.c.bf16 %v366_v23, %v366_v23 }
 0x180   : > { %v264_v26 = vsel %vm262_vm8, %v245_v25, 0 }
 0x181   : > { %273 = vmatpush.bf16.msra.mxu0 %v264_v26 }
 0x184   : > { %368 = vmatmul.msk.bf16.vlgmr.msra.gmra.mxu0 %vm258_vm9, %v257_v27 }
 0x201   : > { %v275_v29 = vpop.f32.mrf.mxu0 }
 0x202   : > { %v279_v30 = vadd.f32 %v275_v29, %v216_v28 }
 0x204   : > { %281 = vst.msk [vmem:[%s206_s25] sm:$0xf] %vm212_vm3, %v279_v30 }
 0x209   : > { %v277_v31 = vpop.f32.mrf.mxu0 }
 0x20a PF: > { %s12_s11 = sadd.s32 1, %s419_s11   ;;  %s494_s9 = smov %s415_s10 }
 0x20b   : > { %p9_p6 = scmp.ge.s32.totalorder %s12_s11, 4   ;;  %s495_s10 = smov %s497_s12 }
 0x20d   :  { %11 = sbr.rel (!%p9_p6) target bundleno = 2 (0x2), region = 65 }

</bundles_post_ra>
